<compile_context>
chip_gen: v7x
topology: tpu7x:2x2x1
jax: 0.10.0
libtpu: 0.0.40
codegen_flags: <defaults>
</compile_context>

<pallas_src>
import numpy as np
import jax
import jax.numpy as jnp
from jax import lax
from jax.experimental import pallas as pl
from jax.experimental.pallas import tpu as pltpu


def _cox_kernel(inv_scale_ref, x_ref, out_ref, t_sc, eh_sc):
    # x_ref: (4, n, bm) stacked [expressions, predicted_tr, predicted_risk, event]
    inv_scale = inv_scale_ref[0]          # scalar in SMEM: 1/(2*sigma*sqrt(2))
    expr = x_ref[0]                       # (n, bm) f32
    tr = x_ref[1]                         # (n, bm)
    h = x_ref[2]                          # (n, bm)  predicted risk
    ev = x_ref[3]                         # (n, bm)  event indicator

    n, bm = expr.shape

    # time_indicator = exp(expr - tr) / max_col / (2*sigma*sqrt(2))
    # computed overflow-safely as exp(z - max_col(z)) * inv_scale.
    z = expr - tr
    z = z - jnp.max(z, axis=0, keepdims=True)
    t = jnp.exp(z) * inv_scale            # (n, bm)
    eh = jnp.exp(h)                       # (n, bm)

    # Stash t and exp(h) in VMEM scratch so rows can be dynamically indexed
    # inside the streaming loop.
    t_sc[...] = t
    eh_sc[...] = eh

    # cumsum[j, c] = sum_i exp(h[i,c]) * 0.5*(1 + erf(t[i,c] - t[j,c]))
    #             + 0.5 * exp(h[j,c])          (diagonal +0.5 fold, erf(0)=0)
    def body(i, acc):
        t_i = t_sc[pl.ds(i, 1), :]        # (1, bm) row i, broadcast over sublanes
        eh_i = eh_sc[pl.ds(i, 1), :]      # (1, bm)
        phi = 0.5 * (1.0 + lax.erf(t_i - t))   # (n, bm)
        return acc + eh_i * phi

    acc0 = 0.5 * eh
    cumsum = lax.fori_loop(0, n, body, acc0, unroll=True)
    log_cumsum = jnp.log(cumsum)          # (n, bm)

    # Per-column contribution, reduced over samples only (lane-dense output).
    out_ref[...] = jnp.sum((h - log_cumsum) * ev, axis=0, keepdims=True)  # (1, bm)


def gaussian_coxph_decay_loss(predicted_risk, expressions, predicted_tr,
                              event_indicator, sigma, *, bm=512):
    """Returns -mean_loglikelihood, matching the PyTorch module."""
    n, m = expressions.shape
    bm = min(bm, m)
    assert m % bm == 0 and bm % 128 == 0, "m must tile into multiples of 128 lanes"
    # Note: n should ideally be a multiple of 8 (sublane) for dense layouts;
    # smaller n still works (masked ops).

    inv_scale = jnp.asarray([1.0 / (2.0 * float(sigma) * np.sqrt(2.0))],
                            dtype=jnp.float32)
    # One DMA per grid step instead of four tiny ones.
    stacked = jnp.stack([expressions, predicted_tr, predicted_risk,
                         event_indicator], axis=0).astype(jnp.float32)  # (4, n, m)

    per_col = pl.pallas_call(
        _cox_kernel,
        out_shape=jax.ShapeDtypeStruct((1, m), jnp.float32),
        grid=(m // bm,),
        in_specs=[
            pl.BlockSpec(memory_space=pltpu.MemorySpace.SMEM),          # inv_scale
            pl.BlockSpec((4, n, bm), lambda k: (0, 0, k)),              # stacked
        ],
        out_specs=pl.BlockSpec((1, bm), lambda k: (0, k)),
        scratch_shapes=[
            pltpu.VMEM((n, bm), jnp.float32),   # t
            pltpu.VMEM((n, bm), jnp.float32),   # exp(h)
        ],
        compiler_params=pltpu.CompilerParams(
            dimension_semantics=("parallel",)),   # disjoint output blocks per step
    )(inv_scale, stacked)

    return -(jnp.sum(per_col) / n)


def reference_loss(predicted_risk, expressions, predicted_tr, event_indicator, sigma):
    """Pure-JAX transcription of the PyTorch forward (for validation)."""
    t = jnp.exp(expressions - predicted_tr)
    t = t / jnp.max(t, axis=0, keepdims=True) / (2.0 * sigma * jnp.sqrt(2.0))
    n, m = expressions.shape
    loc = t[:, None, :] - t[None, :, :]                      # (n, n, m)
    phi = 0.5 * (1.0 + jax.scipy.special.erf(-loc))
    phi = phi + 0.5 * jnp.eye(n, dtype=phi.dtype)[:, :, None]
    # cumsum[k, j] = sum_i exp(h[i, k]) * phi[j, i, k]; log_cumsum = log(cumsum).T
    log_cumsum = jnp.log(jnp.einsum('ik,jik->jk', jnp.exp(predicted_risk), phi))
    mean_ll = jnp.sum((predicted_risk - log_cumsum) * event_indicator) / n
    return -mean_ll


if __name__ == "__main__":
    key = jax.random.PRNGKey(0)
    n, m = 8, 2048     # n samples, m parallel tasks/genes
    k1, k2, k3, k4 = jax.random.split(key, 4)

    predicted_risk = 0.5 * jax.random.normal(k1, (n, m), dtype=jnp.float32)
    expressions = jax.random.normal(k2, (n, m), dtype=jnp.float32)
    predicted_tr = jax.random.normal(k3, (n, m), dtype=jnp.float32)
    event_indicator = (jax.random.uniform(k4, (n, m)) > 0.5).astype(jnp.float32)
    sigma = 0.5

    loss = gaussian_coxph_decay_loss(predicted_risk, expressions, predicted_tr,
                                     event_indicator, sigma, bm=512)
    loss = jax.block_until_ready(loss)

    ref = reference_loss(predicted_risk, expressions, predicted_tr,
                         event_indicator, sigma)
    np.testing.assert_allclose(np.asarray(loss), np.asarray(ref),
                               rtol=1e-4, atol=1e-4)
    print("KERNEL_OK")
</pallas_src>

<mosaic_0001>
module attributes {stable_mosaic.version = 11 : i64} {
  func.func @_cox_kernel(%arg0: i32, %arg1: memref<1xf32, #tpu.memory_space<smem>>, %arg2: memref<4x8x512xf32, #tpu.memory_space<vmem>>, %arg3: memref<1x512xf32, #tpu.memory_space<vmem>>, %arg4: memref<8x512xf32, #tpu.memory_space<vmem>>, %arg5: memref<8x512xf32, #tpu.memory_space<vmem>>) attributes {dimension_semantics = [#tpu.dimension_semantics<parallel>], iteration_bounds = array<i64: 4>, scalar_prefetch = 0 : i64, scratch_operands = 2 : i64, tpu.core_type = #tpu.core_type<tc>, window_params = [{transform_indices = @transform_0, window_bounds = array<i64: 1>}, {transform_indices = @transform_1, window_bounds = array<i64: 4, 8, 512>}, {transform_indices = @transform_2, window_bounds = array<i64: 1, 512>}]} {
    %c0 = arith.constant 0 : index
    %0 = memref.load %arg1[%c0] : memref<1xf32, #tpu.memory_space<smem>>
    %c0_0 = arith.constant 0 : index
    %c0_1 = arith.constant 0 : index
    %c0_2 = arith.constant 0 : index
    %1 = vector.load %arg2[%c0_0, %c0_1, %c0_2] : memref<4x8x512xf32, #tpu.memory_space<vmem>>, vector<1x8x512xf32>
    %2 = vector.shape_cast %1 : vector<1x8x512xf32> to vector<8x512xf32>
    %c1 = arith.constant 1 : index
    %c0_3 = arith.constant 0 : index
    %c0_4 = arith.constant 0 : index
    %3 = vector.load %arg2[%c1, %c0_3, %c0_4] : memref<4x8x512xf32, #tpu.memory_space<vmem>>, vector<1x8x512xf32>
    %4 = vector.shape_cast %3 : vector<1x8x512xf32> to vector<8x512xf32>
    %c2 = arith.constant 2 : index
    %c0_5 = arith.constant 0 : index
    %c0_6 = arith.constant 0 : index
    %5 = vector.load %arg2[%c2, %c0_5, %c0_6] : memref<4x8x512xf32, #tpu.memory_space<vmem>>, vector<1x8x512xf32>
    %6 = vector.shape_cast %5 : vector<1x8x512xf32> to vector<8x512xf32>
    %c3 = arith.constant 3 : index
    %c0_7 = arith.constant 0 : index
    %c0_8 = arith.constant 0 : index
    %7 = vector.load %arg2[%c3, %c0_7, %c0_8] : memref<4x8x512xf32, #tpu.memory_space<vmem>>, vector<1x8x512xf32>
    %8 = vector.shape_cast %7 : vector<1x8x512xf32> to vector<8x512xf32>
    %9 = arith.subf %2, %4 : vector<8x512xf32>
    %cst = arith.constant dense<0xFF800000> : vector<512xf32>
    %10 = vector.multi_reduction <maximumf>, %9, %cst [0] : vector<8x512xf32> to vector<512xf32>
    %11 = vector.shape_cast %10 : vector<512xf32> to vector<1x512xf32>
    %12 = vector.broadcast %11 : vector<1x512xf32> to vector<8x512xf32>
    %13 = arith.subf %9, %12 : vector<8x512xf32>
    %14 = math.exp %13 : vector<8x512xf32>
    %15 = vector.broadcast %0 : f32 to vector<8x512xf32>
    %16 = arith.mulf %14, %15 : vector<8x512xf32>
    %17 = math.exp %6 : vector<8x512xf32>
    %c0_9 = arith.constant 0 : index
    %c0_10 = arith.constant 0 : index
    %18 = vector.load %arg4[%c0_9, %c0_10] : memref<8x512xf32, #tpu.memory_space<vmem>>, vector<8x512xf32>
    tpu.vector_store %arg4[%c0_9, %c0_10], %16 {strides = array<i32>} : memref<8x512xf32, #tpu.memory_space<vmem>>, vector<8x512xf32>,
    %c0_11 = arith.constant 0 : index
    %c0_12 = arith.constant 0 : index
    %19 = vector.load %arg5[%c0_11, %c0_12] : memref<8x512xf32, #tpu.memory_space<vmem>>, vector<8x512xf32>
    tpu.vector_store %arg5[%c0_11, %c0_12], %17 {strides = array<i32>} : memref<8x512xf32, #tpu.memory_space<vmem>>, vector<8x512xf32>,
    %cst_13 = arith.constant 5.000000e-01 : f32
    %20 = vector.broadcast %cst_13 : f32 to vector<8x512xf32>
    %21 = arith.mulf %20, %17 : vector<8x512xf32>
    %c0_i32 = arith.constant 0 : i32
    %22 = arith.index_cast %c0_i32 : i32 to index
    %c0_14 = arith.constant 0 : index
    %23 = vector.load %arg4[%22, %c0_14] : memref<8x512xf32, #tpu.memory_space<vmem>>, vector<1x512xf32>
    %24 = arith.index_cast %c0_i32 : i32 to index
    %c0_15 = arith.constant 0 : index
    %25 = vector.load %arg5[%24, %c0_15] : memref<8x512xf32, #tpu.memory_space<vmem>>, vector<1x512xf32>
    %26 = vector.broadcast %23 : vector<1x512xf32> to vector<8x512xf32>
    %27 = arith.subf %26, %16 : vector<8x512xf32>
    %28 = math.erf %27 : vector<8x512xf32>
    %cst_16 = arith.constant 1.000000e+00 : f32
    %29 = vector.broadcast %cst_16 : f32 to vector<8x512xf32>
    %30 = arith.addf %29, %28 : vector<8x512xf32>
    %cst_17 = arith.constant 5.000000e-01 : f32
    %31 = vector.broadcast %cst_17 : f32 to vector<8x512xf32>
    %32 = arith.mulf %31, %30 : vector<8x512xf32>
    %33 = vector.broadcast %25 : vector<1x512xf32> to vector<8x512xf32>
    %34 = arith.mulf %33, %32 : vector<8x512xf32>
    %35 = arith.addf %21, %34 : vector<8x512xf32>
    %c1_i32 = arith.constant 1 : i32
    %36 = arith.index_cast %c1_i32 : i32 to index
    %c0_18 = arith.constant 0 : index
    %37 = vector.load %arg4[%36, %c0_18] : memref<8x512xf32, #tpu.memory_space<vmem>>, vector<1x512xf32>
    %38 = arith.index_cast %c1_i32 : i32 to index
    %c0_19 = arith.constant 0 : index
    %39 = vector.load %arg5[%38, %c0_19] : memref<8x512xf32, #tpu.memory_space<vmem>>, vector<1x512xf32>
    %40 = vector.broadcast %37 : vector<1x512xf32> to vector<8x512xf32>
    %41 = arith.subf %40, %16 : vector<8x512xf32>
    %42 = math.erf %41 : vector<8x512xf32>
    %cst_20 = arith.constant 1.000000e+00 : f32
    %43 = vector.broadcast %cst_20 : f32 to vector<8x512xf32>
    %44 = arith.addf %43, %42 : vector<8x512xf32>
    %cst_21 = arith.constant 5.000000e-01 : f32
    %45 = vector.broadcast %cst_21 : f32 to vector<8x512xf32>
    %46 = arith.mulf %45, %44 : vector<8x512xf32>
    %47 = vector.broadcast %39 : vector<1x512xf32> to vector<8x512xf32>
    %48 = arith.mulf %47, %46 : vector<8x512xf32>
    %49 = arith.addf %35, %48 : vector<8x512xf32>
    %c2_i32 = arith.constant 2 : i32
    %50 = arith.index_cast %c2_i32 : i32 to index
    %c0_22 = arith.constant 0 : index
    %51 = vector.load %arg4[%50, %c0_22] : memref<8x512xf32, #tpu.memory_space<vmem>>, vector<1x512xf32>
    %52 = arith.index_cast %c2_i32 : i32 to index
    %c0_23 = arith.constant 0 : index
    %53 = vector.load %arg5[%52, %c0_23] : memref<8x512xf32, #tpu.memory_space<vmem>>, vector<1x512xf32>
    %54 = vector.broadcast %51 : vector<1x512xf32> to vector<8x512xf32>
    %55 = arith.subf %54, %16 : vector<8x512xf32>
    %56 = math.erf %55 : vector<8x512xf32>
    %cst_24 = arith.constant 1.000000e+00 : f32
    %57 = vector.broadcast %cst_24 : f32 to vector<8x512xf32>
    %58 = arith.addf %57, %56 : vector<8x512xf32>
    %cst_25 = arith.constant 5.000000e-01 : f32
    %59 = vector.broadcast %cst_25 : f32 to vector<8x512xf32>
    %60 = arith.mulf %59, %58 : vector<8x512xf32>
    %61 = vector.broadcast %53 : vector<1x512xf32> to vector<8x512xf32>
    %62 = arith.mulf %61, %60 : vector<8x512xf32>
    %63 = arith.addf %49, %62 : vector<8x512xf32>
    %c3_i32 = arith.constant 3 : i32
    %64 = arith.index_cast %c3_i32 : i32 to index
    %c0_26 = arith.constant 0 : index
    %65 = vector.load %arg4[%64, %c0_26] : memref<8x512xf32, #tpu.memory_space<vmem>>, vector<1x512xf32>
    %66 = arith.index_cast %c3_i32 : i32 to index
    %c0_27 = arith.constant 0 : index
    %67 = vector.load %arg5[%66, %c0_27] : memref<8x512xf32, #tpu.memory_space<vmem>>, vector<1x512xf32>
    %68 = vector.broadcast %65 : vector<1x512xf32> to vector<8x512xf32>
    %69 = arith.subf %68, %16 : vector<8x512xf32>
    %70 = math.erf %69 : vector<8x512xf32>
    %cst_28 = arith.constant 1.000000e+00 : f32
    %71 = vector.broadcast %cst_28 : f32 to vector<8x512xf32>
    %72 = arith.addf %71, %70 : vector<8x512xf32>
    %cst_29 = arith.constant 5.000000e-01 : f32
    %73 = vector.broadcast %cst_29 : f32 to vector<8x512xf32>
    %74 = arith.mulf %73, %72 : vector<8x512xf32>
    %75 = vector.broadcast %67 : vector<1x512xf32> to vector<8x512xf32>
    %76 = arith.mulf %75, %74 : vector<8x512xf32>
    %77 = arith.addf %63, %76 : vector<8x512xf32>
    %c4_i32 = arith.constant 4 : i32
    %78 = arith.index_cast %c4_i32 : i32 to index
    %c0_30 = arith.constant 0 : index
    %79 = vector.load %arg4[%78, %c0_30] : memref<8x512xf32, #tpu.memory_space<vmem>>, vector<1x512xf32>
    %80 = arith.index_cast %c4_i32 : i32 to index
    %c0_31 = arith.constant 0 : index
    %81 = vector.load %arg5[%80, %c0_31] : memref<8x512xf32, #tpu.memory_space<vmem>>, vector<1x512xf32>
    %82 = vector.broadcast %79 : vector<1x512xf32> to vector<8x512xf32>
    %83 = arith.subf %82, %16 : vector<8x512xf32>
    %84 = math.erf %83 : vector<8x512xf32>
    %cst_32 = arith.constant 1.000000e+00 : f32
    %85 = vector.broadcast %cst_32 : f32 to vector<8x512xf32>
    %86 = arith.addf %85, %84 : vector<8x512xf32>
    %cst_33 = arith.constant 5.000000e-01 : f32
    %87 = vector.broadcast %cst_33 : f32 to vector<8x512xf32>
    %88 = arith.mulf %87, %86 : vector<8x512xf32>
    %89 = vector.broadcast %81 : vector<1x512xf32> to vector<8x512xf32>
    %90 = arith.mulf %89, %88 : vector<8x512xf32>
    %91 = arith.addf %77, %90 : vector<8x512xf32>
    %c5_i32 = arith.constant 5 : i32
    %92 = arith.index_cast %c5_i32 : i32 to index
    %c0_34 = arith.constant 0 : index
    %93 = vector.load %arg4[%92, %c0_34] : memref<8x512xf32, #tpu.memory_space<vmem>>, vector<1x512xf32>
    %94 = arith.index_cast %c5_i32 : i32 to index
    %c0_35 = arith.constant 0 : index
    %95 = vector.load %arg5[%94, %c0_35] : memref<8x512xf32, #tpu.memory_space<vmem>>, vector<1x512xf32>
    %96 = vector.broadcast %93 : vector<1x512xf32> to vector<8x512xf32>
    %97 = arith.subf %96, %16 : vector<8x512xf32>
    %98 = math.erf %97 : vector<8x512xf32>
    %cst_36 = arith.constant 1.000000e+00 : f32
    %99 = vector.broadcast %cst_36 : f32 to vector<8x512xf32>
    %100 = arith.addf %99, %98 : vector<8x512xf32>
    %cst_37 = arith.constant 5.000000e-01 : f32
    %101 = vector.broadcast %cst_37 : f32 to vector<8x512xf32>
    %102 = arith.mulf %101, %100 : vector<8x512xf32>
    %103 = vector.broadcast %95 : vector<1x512xf32> to vector<8x512xf32>
    %104 = arith.mulf %103, %102 : vector<8x512xf32>
    %105 = arith.addf %91, %104 : vector<8x512xf32>
    %c6_i32 = arith.constant 6 : i32
    %106 = arith.index_cast %c6_i32 : i32 to index
    %c0_38 = arith.constant 0 : index
    %107 = vector.load %arg4[%106, %c0_38] : memref<8x512xf32, #tpu.memory_space<vmem>>, vector<1x512xf32>
    %108 = arith.index_cast %c6_i32 : i32 to index
    %c0_39 = arith.constant 0 : index
    %109 = vector.load %arg5[%108, %c0_39] : memref<8x512xf32, #tpu.memory_space<vmem>>, vector<1x512xf32>
    %110 = vector.broadcast %107 : vector<1x512xf32> to vector<8x512xf32>
    %111 = arith.subf %110, %16 : vector<8x512xf32>
    %112 = math.erf %111 : vector<8x512xf32>
    %cst_40 = arith.constant 1.000000e+00 : f32
    %113 = vector.broadcast %cst_40 : f32 to vector<8x512xf32>
    %114 = arith.addf %113, %112 : vector<8x512xf32>
    %cst_41 = arith.constant 5.000000e-01 : f32
    %115 = vector.broadcast %cst_41 : f32 to vector<8x512xf32>
    %116 = arith.mulf %115, %114 : vector<8x512xf32>
    %117 = vector.broadcast %109 : vector<1x512xf32> to vector<8x512xf32>
    %118 = arith.mulf %117, %116 : vector<8x512xf32>
    %119 = arith.addf %105, %118 : vector<8x512xf32>
    %c7_i32 = arith.constant 7 : i32
    %120 = arith.index_cast %c7_i32 : i32 to index
    %c0_42 = arith.constant 0 : index
    %121 = vector.load %arg4[%120, %c0_42] : memref<8x512xf32, #tpu.memory_space<vmem>>, vector<1x512xf32>
    %122 = arith.index_cast %c7_i32 : i32 to index
    %c0_43 = arith.constant 0 : index
    %123 = vector.load %arg5[%122, %c0_43] : memref<8x512xf32, #tpu.memory_space<vmem>>, vector<1x512xf32>
    %124 = vector.broadcast %121 : vector<1x512xf32> to vector<8x512xf32>
    %125 = arith.subf %124, %16 : vector<8x512xf32>
    %126 = math.erf %125 : vector<8x512xf32>
    %cst_44 = arith.constant 1.000000e+00 : f32
    %127 = vector.broadcast %cst_44 : f32 to vector<8x512xf32>
    %128 = arith.addf %127, %126 : vector<8x512xf32>
    %cst_45 = arith.constant 5.000000e-01 : f32
    %129 = vector.broadcast %cst_45 : f32 to vector<8x512xf32>
    %130 = arith.mulf %129, %128 : vector<8x512xf32>
    %131 = vector.broadcast %123 : vector<1x512xf32> to vector<8x512xf32>
    %132 = arith.mulf %131, %130 : vector<8x512xf32>
    %133 = arith.addf %119, %132 : vector<8x512xf32>
    %c8_i32 = arith.constant 8 : i32
    %134 = math.log %133 : vector<8x512xf32>
    %135 = arith.subf %6, %134 : vector<8x512xf32>
    %136 = arith.mulf %135, %8 : vector<8x512xf32>
    %cst_46 = arith.constant dense<0.000000e+00> : vector<512xf32>
    %137 = vector.multi_reduction <add>, %136, %cst_46 [0] : vector<8x512xf32> to vector<512xf32>
    %138 = vector.shape_cast %137 : vector<512xf32> to vector<1x512xf32>
    %c0_47 = arith.constant 0 : index
    %c0_48 = arith.constant 0 : index
    %139 = vector.load %arg3[%c0_47, %c0_48] : memref<1x512xf32, #tpu.memory_space<vmem>>, vector<1x512xf32>
    tpu.vector_store %arg3[%c0_47, %c0_48], %138 {strides = array<i32>} : memref<1x512xf32, #tpu.memory_space<vmem>>, vector<1x512xf32>,
    return
  }
  func.func @transform_0(%arg0: i32) -> i32 {
    %c0_i32 = arith.constant 0 : i32
    %c0_i32_0 = arith.constant 0 : i32
    return %c0_i32 : i32
  }
  func.func @transform_1(%arg0: i32) -> (i32, i32, i32) {
    %c0_i32 = arith.constant 0 : i32
    %c0_i32_0 = arith.constant 0 : i32
    %c0_i32_1 = arith.constant 0 : i32
    return %c0_i32, %c0_i32_0, %arg0 : i32, i32, i32
  }
  func.func @transform_2(%arg0: i32) -> (i32, i32) {
    %c0_i32 = arith.constant 0 : i32
    %c0_i32_0 = arith.constant 0 : i32
    return %c0_i32, %arg0 : i32, i32
  }
}

</mosaic_0001>

<bundles_post_ra>
// kernel: tpu_custom_call.1
= control target key start
LH: loop header
LB: loop body
LE: loop exit
PB: predicated region body
PF: predicated region fallthrough
CT: control target
= control target key end

     0   :  { %s1755_s0 = inlined_call_operand.<no memory space> [shape: f32[1], index: 0, kind: input, shape index: {}]   ;;  %s1756_s1 = inlined_call_operand.hbm [shape: f32[4,8,2048], index: 1, kind: input, shape index: {}]   ;;  %s1757_s2 = inlined_call_operand.hbm [shape: f32[1,2048], index: 2, kind: output, shape index: {}]  }
   0x1   :  { %7 = sst [smem:[#allocation4]] %s1755_s0 }
   0x2   :  { %8 = vsyncpa [#allocation6], 0 }
   0x3   :  { %10 = vsyncpa [#allocation6 + $0x1], 0 }
   0x4   :  { %11 = vsyncpa [#allocation7], 0 }
   0x5   :  { %13 = vsyncpa [#allocation7 + $0x1], 0  ;;  %s1255_s11 = smov 0   ;;  %s1257_s12 = smov 0  }
   0x6   :  { %s1259_s13 = smov 0   ;;  %s1261_s14 = smov 0  }
   0x7 LB: > { %s1276_s0 = sadd.s32 4294967295, %s1229_s14   ;;  %s967_s15 = sadd.s32 4294967294, %s1229_s14   ;;  %s1229_s14 = sphi %s1261_s14, %s1796_s14   ;;  %s1225_s13 = sphi %s1259_s13, %s1795_s13   ;;  %s1221_s12 = sphi %s1257_s12, %s1794_s12   ;;  %s1217_s11 = sphi %s1255_s11, %s1793_s11  }
   0x8   : > { %s1280_s16 = sadd.s32 1, %s1229_s14   ;;  %s47_s17 = sadd.s32 1, %s1225_s13 }
   0x9   : > { %s44_s18 = ssub.s32 %s1229_s14, %s1280_s16  ;;  %p54_p0 = scmp.ne.s32.totalorder %s1225_s13, %s1221_s12 }
   0xa   : > { %p45_p1 = scmp.eq.s32.totalorder %s44_s18, 0  ;;  %p55_p2 = scmp.eq.s32.totalorder %s1229_s14, 0 }
   0xb   : > { %p60_p3 = scmp.ne.s32.totalorder %s1221_s12, %s1217_s11  ;;  %p61_p4 = scmp.eq.s32.totalorder %s1276_s0, 0 }
   0xc   : > { %s1292_s19 = scalar_select %p45_p1, %s1225_s13, %s47_s17  }
   0xd   : > { %p1294_p5 = por %p55_p2, %p54_p0  ;;  %p1298_p6 = por %p61_p4, %p60_p3 }
   0xe   : > { %p84_p7 = scmp.eq.s32.totalorder %s1276_s0, 3  ;;  %p90_p8 = scmp.eq.s32.totalorder %s967_s15, 3 }
   0xf   : > { %p1007_p9 = scmp.lt.s32.totalorder %s1229_s14, 4  ;;  %s113_s24 = sand.u32 1, %s1225_s13  }
  0x10   : > { %p1304_p10 = por %p84_p7, %p54_p0  ;;  %p1308_p11 = por %p90_p8, %p60_p3 }
  0x11   : > { %s993_s25 = sshll.u32 %s1229_s14, 9  ;;  %s970_s26 = sshll.u32 %s113_s24, 7 }
  0x12   : > { %s1762_s22 = scalar_select %p1304_p10, 1, 0 }
  0x13   : > { %s1763_s23 = scalar_select %p1308_p11, 1, 0 }
  0x14   : > { %s1317_s29 = scalar_lea.hbm %s1756_s1, %s993_s25  ;;  %s117_s30 = scalar_lea.vmem [#allocation5], %s970_s26 }
  0x15   : > { %s124_s3 = sshll.u32 %s117_s30, 4  ;;  %p1321_p12 = pnand %p1007_p9, %p1294_p5  ;;  %s1325_s3 = int_to_ptr.vmem [resolvable:$true] %s124_s3 }
  0x16   : > { %s1328_s5 = scalar_lea.sflag [#allocation6], %s113_s24  ;;  %s1133_s6 = scalar_lea.hbm %s1317_s29, 2048 }
  0x17   : > { %p1134_p0 = scmp.ne.s32.totalorder %s1317_s29, %s1133_s6  ;;  %p1135_p1 = pneg %p1321_p12 }
  0x18   : > { %s1138_s9 = scalar_lea.hbm %s1756_s1, 8192  ;;  %p1139_p4 = scmp.lt.u32.totalorder %s1317_s29, %s1756_s1 }
  0x19   : > { %p1136_p2 = pnand %p1135_p1, %p1134_p0  ;;  %p1140_p5 = scmp.lt.u32.totalorder %s1138_s9, %s1133_s6 }
  0x1a   : > { %p1142_p8 = scmp.lt.u32.totalorder %s1133_s6, %s1317_s29 }
  0x1b   : > { %p1137_p3 = pneg %p1136_p2  ;;  %p1141_p7 = por %p1140_p5, %p1139_p4 }
  0x1d   : > { %p1143_p9 = por %p1142_p8, %p1141_p7 }
  0x1f   : > { %p1144_p13 = pnand %p1143_p9, %p1137_p3 }
  0x21   : > { %1147 = shalt.err (!%p1144_p13)
}
  0x22   : > { %s1148_s17 = scalar_lea.vmem %s1325_s3, 2048  ;;  %s1231_s18 = smov [#allocation5]  }
  0x23   : > { %p1149_p0 = scmp.ne.s32.totalorder %s1325_s3, %s1148_s17  ;;  %s1153_s20 = sshll.u32 %s1231_s18, 4  ;;  %s1154_s20 = int_to_ptr.vmem [resolvable:$false] %s1153_s20 }
  0x24   : > { %s1155_s24 = scalar_lea.vmem %s1154_s20, 4096  ;;  %p1156_p10 = scmp.lt.s32.totalorder %s1325_s3, %s1154_s20 }
  0x25   : > { %p1151_p2 = pnand %p1149_p0, %p1135_p1  ;;  %p1157_p4 = scmp.lt.s32.totalorder %s1155_s24, %s1148_s17 }
  0x27   : > { %p1152_p11 = pneg %p1151_p2  ;;  %p1158_p5 = por %p1157_p4, %p1156_p10 }
  0x29   : > { %p1159_p7 = pnand %p1158_p5, %p1152_p11 }
  0x2b   : > { %1162 = shalt.err (!%p1159_p7)
}
  0x2c   : > { %s1232_s25 = smov 2048   ;;  %s1233_s26 = smov 512  }
  0x2d   : > { %s1234_s27 = smov 32   ;;  %p132_p13 = scmp.lt.s32.totalorder %s1229_s14, 5 }
  0x2e   : > { %1002 = dma.hbm_to_vmem [thread:$0]  (!%p1321_p12), %s1317_s29, 2048, %s1325_s3, %s1328_s5, %s1232_s25, %s1233_s26, %s1234_s27  }
  0x2f   : > { %p1765_p1 = scmp.ge.s32.totalorder %s1229_s14, 1 }
  0x31   : > { %p133_p3 = pnand %p1765_p1, %p132_p13 }
  0x32   : > { %s1360_s28 = sand.u32 (!%p133_p3), 1, %s1221_s12  }
  0x33   : > { %136 = sbr.rel (%p133_p3) target bundleno = 223 (0xdf), region = 28  ;;  %s974_s30 = sshll.u32 (!%p133_p3), %s1360_s28, 7 }
  0x34   : > { %s139_s6 = scalar_lea.sflag (!%p133_p3), [#allocation6], %s1360_s28  ;;  %s1364_s7 = scalar_lea.vmem (!%p133_p3), [#allocation5], %s974_s30 }
  0x3a   : > { %1208 = dma.done.wait (%p1298_p6), %s139_s6, 2048  }
  0x3b   : > { %1210 = vsyncadd (%p1298_p6), %s139_s6, 4294965248  ;;  %v166_v0 = vld [vmem:[%s1364_s7] sm:$0xff]  ;;  %v167_v2 = vld [vmem:[%s1364_s7 + $0x8] sm:$0xff]  ;;  %s165_s21 = sld [smem:[#allocation4]]  ;;  %v1759_v57 = vlaneseq  ;;  %s975_s29 = sshll.u32 %s1360_s28, 2 }
  0x3c   : > { %v976_v1 = vld [vmem:[%s1364_s7 + $0x20] sm:$0xff]  ;;  %v977_v4 = vld [vmem:[%s1364_s7 + $0x28] sm:$0xff]  ;;  %v168_v5 = vld [vmem:[%s1364_s7 + $0x10] sm:$0xff]  ;;  %s162_s3 = scalar_lea.vmem [#allocation8], %s975_s29  ;;  %s994_s5 = sshll.u32 %s1276_s0, 6 }
  0x3d   : > { %v185_v3 = vsub.f32 %v166_v0, %v976_v1  ;;  %v978_v6 = vld [vmem:[%s1364_s7 + $0x30] sm:$0xff]  ;;  %v186_v7 = vsub.f32 %v167_v2, %v977_v4  ;;  %v169_v9 = vld [vmem:[%s1364_s7 + $0x18] sm:$0xff]  ;;  %v1379_v11 = vld [vmem:[%s1364_s7 + $0x40] sm:$0xff]  ;;  %v1402_v1 = vshrl.u32 %v1759_v57, 7  ;;  %s897_s4 = sshll.u32 %s162_s3, 4  ;;  %s1714_s10 = scalar_lea.hbm %s1757_s2, %s994_s5  ;;  %s1709_s4 = int_to_ptr.vmem [resolvable:$true] %s897_s4 }
  0x3e   : > { %v187_v8 = vsub.f32 %v168_v5, %v978_v6  ;;  %v979_v10 = vld [vmem:[%s1364_s7 + $0x38] sm:$0xff]  ;;  %v230_v14 = vmul.f32 1.442695, %v1379_v11  ;;  %v1383_v15 = vld [vmem:[%s1364_s7 + $0x48] sm:$0xff]  ;;  %v1386_v16 = vld [vmem:[%s1364_s7 + $0x50] sm:$0xff]  ;;  %s883_s15 = scalar_lea.sflag [#allocation7], %s1360_s28 }
  0x3f   : > { %v189_v12 = vrot.slane %v185_v3, 4  ;;  %v188_v13 = vsub.f32 %v169_v9, %v979_v10  ;;  %v1389_v17 = vld [vmem:[%s1364_s7 + $0x58] sm:$0xff]  ;;  %v195_v18 = vrot.slane %v186_v7, 4  ;;  %v232_v20 = vmul.f32 1.442695, %v1383_v15  ;;  %s1163_s17 = scalar_lea.vmem %s1709_s4, 64 }
  0x40   : > { %v201_v19 = vrot.slane %v187_v8, 4  ;;  %v234_v21 = vmul.f32 1.442695, %v1386_v16  ;;  %1045 = vpow2.f32 %v230_v14  ;;  %v236_v24 = vmul.f32 1.442695, %v1389_v17  ;;  %p1164_p6 = scmp.ne.s32.totalorder %s1709_s4, %s1163_s17  ;;  %p1791_p10 = scmp.ne.s32.totalorder %s1762_s22, 0 }
  0x41   : > { %v190_v22 = vmax.f32 %v185_v3, %v189_v12  ;;  %v207_v23 = vrot.slane %v188_v13, 4  ;;  %v196_v25 = vmax.f32 %v186_v7, %v195_v18  ;;  %1047 = vpow2.f32 %v232_v20  ;;  %s1236_s0 = smov [#allocation8]  }
  0x42   : > { %v202_v26 = vmax.f32 %v187_v8, %v201_v19  ;;  %1049 = vpow2.f32 %v234_v21  ;;  %v225_v56 = vstv %s165_s21  ;;  %v1412_v4 = vsub.s32 0, %v1402_v1  ;;  %p1165_p11 = pnand %p1164_p6, %p1791_p10  ;;  %s1167_s18 = sshll.u32 %s1236_s0, 4  ;;  %s1168_s18 = int_to_ptr.vmem [resolvable:$false] %s1167_s18 }
  0x43   : > { %v191_v27 = vrot.slane %v190_v22, 2  ;;  %v208_v28 = vmax.f32 %v188_v13, %v207_v23  ;;  %v197_v29 = vrot.slane %v196_v25, 2  ;;  %1051 = vpow2.f32 %v236_v24  ;;  %s1169_s20 = scalar_lea.vmem %s1168_s18, 128  ;;  %p1170_p8 = scmp.lt.s32.totalorder %s1709_s4, %s1168_s18 }
  0x44   : > { %v203_v30 = vrot.slane %v202_v26, 2  ;;  %v1415_v5 = vsub.s32 1, %v1402_v1  ;;  %v1425_v9 = vsub.s32 3, %v1402_v1  ;;  %p1166_p12 = pneg %p1165_p11  ;;  %p1171_p9 = scmp.lt.s32.totalorder %s1169_s20, %s1163_s17 }
  0x45   : > { %v192_v31 = vmax.f32 %v190_v22, %v191_v27  ;;  %v209_v32 = vrot.slane %v208_v28, 2  ;;  %v198_v33 = vmax.f32 %v196_v25, %v197_v29 }
  0x46   : > { %v204_v34 = vmax.f32 %v202_v26, %v203_v30  ;;  %p1172_p0 = por %p1171_p9, %p1170_p8 }
  0x47   : > { %v193_v35 = vrot.slane %v192_v31, 1  ;;  %v210_v36 = vmax.f32 %v208_v28, %v209_v32  ;;  %v199_v37 = vrot.slane %v198_v33, 1 }
  0x48   : > { %v205_v38 = vrot.slane %v204_v34, 1  ;;  %p1173_p2 = pnand %p1172_p0, %p1166_p12 }
  0x49   : > { %v194_v39 = vmax.f32 %v192_v31, %v193_v35  ;;  %v211_v40 = vrot.slane %v210_v36, 1  ;;  %v200_v41 = vmax.f32 %v198_v33, %v199_v37 }
  0x4a   : > { %v206_v42 = vmax.f32 %v204_v34, %v205_v38  ;;  %v1046_v43 = vpop.eup %1045 }
  0x4b   : > { %v213_v44 = vsub.f32 %v185_v3, %v194_v39  ;;  %v212_v45 = vmax.f32 %v210_v36, %v211_v40  ;;  %v1048_v46 = vpop.eup %1047  ;;  %v214_v47 = vsub.f32 %v186_v7, %v200_v41  ;;  %242 = vst [vmem:[#allocation3] sm:$0xff] %v1046_v43  ;;  %v1417_v6 = vmul.f32 0.5, %v1046_v43 }
  0x4c   : > { %v215_v48 = vsub.f32 %v187_v8, %v206_v42  ;;  %v1050_v49 = vpop.eup %1049  ;;  %243 = vst [vmem:[#allocation3 + $0x8] sm:$0xff] %v1048_v46  ;;  %v1422_v8 = vsub.s32 2, %v1402_v1  ;;  %v1427_v10 = vmul.f32 0.5, %v1048_v46 }
  0x4d   : > { %v217_v50 = vmul.f32 1.442695, %v213_v44  ;;  %v216_v51 = vsub.f32 %v188_v13, %v212_v45  ;;  %v1052_v52 = vpop.eup %1051  ;;  %v219_v53 = vmul.f32 1.442695, %v214_v47  ;;  %244 = vst [vmem:[#allocation3 + $0x10] sm:$0xff] %v1050_v49  ;;  %v1429_v12 = vmul.f32 0.5, %v1050_v49 }
  0x4e   : > { %v221_v54 = vmul.f32 1.442695, %v215_v48  ;;  %245 = vst [vmem:[#allocation3 + $0x18] sm:$0xff] %v1052_v52  ;;  %v1431_v13 = vmul.f32 0.5, %v1052_v52 }
  0x4f   : > { %1053 = vpow2.f32 %v217_v50  ;;  %v223_v55 = vmul.f32 1.442695, %v216_v51 }
  0x50   : > { %1055 = vpow2.f32 %v219_v53 }
  0x51   : > { %1057 = vpow2.f32 %v221_v54 }
  0x52   : > { %1059 = vpow2.f32 %v223_v55 }
  0x55   : > { %v1409_v3 = vld [vmem:[#allocation3] ss:$8 sm:$0xf]  ;;  %v1419_v7 = vld [vmem:[#allocation3 + $0x1] ss:$8 sm:$0xf] }
  0x56   : > { %v1433_v14 = vld [vmem:[#allocation3 + $0x2] ss:$8 sm:$0xf]  ;;  %v1435_v18 = vld [vmem:[#allocation3 + $0x3] ss:$8 sm:$0xf]  ;;  %v293_v19 = vrot.slane %v1409_v3, %v1412_v4  ;;  %v297_v20 = vrot.slane %v1409_v3, %v1415_v5  ;;  %v301_v21 = vrot.slane %v1409_v3, %v1422_v8  ;;  %v305_v22 = vrot.slane %v1409_v3, %v1425_v9 }
  0x57   : > { %v363_v23 = vrot.slane %v1419_v7, %v1412_v4  ;;  %v367_v24 = vrot.slane %v1419_v7, %v1415_v5  ;;  %v371_v25 = vrot.slane %v1419_v7, %v1422_v8  ;;  %v375_v26 = vrot.slane %v1419_v7, %v1425_v9  ;;  %v1453_v27 = vld [vmem:[#allocation3 + $0x4] ss:$8 sm:$0xf]  ;;  %v1475_v43 = vld [vmem:[#allocation3 + $0x5] ss:$8 sm:$0xf] }
  0x59   : > { %v1054_v58 = vpop.eup %1053 }
  0x5a   : > { %v1056_v59 = vpop.eup %1055  ;;  %v1394_v60 = vmul.f32 %v1054_v58, %v225_v56 }
  0x5b   : > { %v1058_v61 = vpop.eup %1057  ;;  %v1396_v62 = vmul.f32 %v1056_v59, %v225_v56 }
  0x5c   : > { %v1060_v63 = vpop.eup %1059  ;;  %238 = vst [vmem:[#allocation2] sm:$0xff] %v1394_v60  ;;  %v1399_v0 = vmul.f32 %v1058_v61, %v225_v56  ;;  %v1497_v61 = vld [vmem:[#allocation3 + $0x6] ss:$8 sm:$0xf] }
  0x5d   : > { %239 = vst [vmem:[#allocation2 + $0x8] sm:$0xff] %v1396_v62  ;;  %v1405_v2 = vmul.f32 %v1060_v63, %v225_v56 }
  0x5e   : > { %240 = vst [vmem:[#allocation2 + $0x10] sm:$0xff] %v1399_v0 }
  0x5f   : > { %241 = vst [vmem:[#allocation2 + $0x18] sm:$0xff] %v1405_v2 }
  0x66   : > { %v250_v32 = vld [vmem:[#allocation2] ss:$8 sm:$0xf]  ;;  %v319_v33 = vld [vmem:[#allocation2 + $0x1] ss:$8 sm:$0xf] }
  0x67   : > { %v256_v38 = vrot.slane %v250_v32, %v1412_v4  ;;  %v260_v39 = vrot.slane %v250_v32, %v1415_v5  ;;  %v264_v40 = vrot.slane %v250_v32, %v1422_v8  ;;  %v268_v41 = vrot.slane %v250_v32, %v1425_v9  ;;  %v389_v42 = vld [vmem:[#allocation2 + $0x2] ss:$8 sm:$0xf]  ;;  %v1555_v36 = vld [vmem:[#allocation2 + $0x6] ss:$8 sm:$0xf] }
  0x68   : > { %v326_v44 = vrot.slane %v319_v33, %v1412_v4  ;;  %v330_v45 = vrot.slane %v319_v33, %v1415_v5  ;;  %v334_v51 = vrot.slane %v319_v33, %v1422_v8  ;;  %v338_v53 = vrot.slane %v319_v33, %v1425_v9 }
  0x69   : > { %v273_v48 = vsub.f32 %v256_v38, %v1394_v60  ;;  %v274_v49 = vsub.f32 %v260_v39, %v1396_v62  ;;  %v275_v50 = vsub.f32 %v264_v40, %v1399_v0  ;;  %v276_v52 = vsub.f32 %v268_v41, %v1405_v2  ;;  %v459_v38 = vld [vmem:[#allocation2 + $0x3] ss:$8 sm:$0xf]  ;;  %v599_v41 = vld [vmem:[#allocation2 + $0x5] ss:$8 sm:$0xf] }
  0x6a   : > { %v343_v56 = vsub.f32 %v326_v44, %v1394_v60  ;;  %v396_v58 = vrot.slane %v389_v42, %v1412_v4  ;;  %v344_v63 = vsub.f32 %v330_v45, %v1396_v62  ;;  %v400_v32 = vrot.slane %v389_v42, %v1415_v5  ;;  %v529_v45 = vld [vmem:[#allocation2 + $0x4] ss:$8 sm:$0xf] }
  0x6b   : > { %1061 = verf.f32 %v273_v48  ;;  %v345_v39 = vsub.f32 %v334_v51, %v1399_v0  ;;  %v404_v40 = vrot.slane %v389_v42, %v1422_v8  ;;  %v346_v44 = vsub.f32 %v338_v53, %v1405_v2 }
  0x6c   : > { %1063 = verf.f32 %v274_v49  ;;  %v408_v48 = vrot.slane %v389_v42, %v1425_v9  ;;  %v1511_v49 = vld [vmem:[#allocation3 + $0x7] ss:$8 sm:$0xf]  ;;  %v466_v53 = vrot.slane %v459_v38, %v1412_v4  ;;  %v478_v42 = vrot.slane %v459_v38, %v1425_v9 }
  0x6d   : > { %1065 = verf.f32 %v275_v50  ;;  %v413_v50 = vsub.f32 %v396_v58, %v1394_v60  ;;  %v470_v58 = vrot.slane %v459_v38, %v1415_v5  ;;  %v606_v51 = vrot.slane %v599_v41, %v1412_v4 }
  0x6e   : > { %1067 = verf.f32 %v276_v52  ;;  %v414_v52 = vsub.f32 %v400_v32, %v1396_v62  ;;  %v416_v57 = vsub.f32 %v408_v48, %v1405_v2  ;;  %v536_v48 = vrot.slane %v529_v45, %v1412_v4 }
  0x6f   : > { %1069 = verf.f32 %v343_v56  ;;  %v415_v56 = vsub.f32 %v404_v40, %v1399_v0  ;;  %v486_v54 = vsub.f32 %v478_v42, %v1405_v2  ;;  %v684_v28 = vrot.slane %v1555_v36, %v1422_v8 }
  0x70   : > { %1071 = verf.f32 %v344_v63  ;;  %v474_v63 = vrot.slane %v459_v38, %v1422_v8  ;;  %v540_v38 = vrot.slane %v529_v45, %v1415_v5  ;;  %v553_v46 = vsub.f32 %v536_v48, %v1394_v60 }
  0x71   : > { %1073 = verf.f32 %v345_v39  ;;  %v544_v39 = vrot.slane %v529_v45, %v1422_v8 }
  0x72   : > { %1075 = verf.f32 %v346_v44  ;;  %v483_v44 = vsub.f32 %v466_v53, %v1394_v60  ;;  %v548_v53 = vrot.slane %v529_v45, %v1425_v9  ;;  %v1550_v45 = vsub.f32 %v540_v38, %v1396_v62 }
  0x73   : > { %1077 = verf.f32 %v413_v50  ;;  %v484_v50 = vsub.f32 %v470_v58, %v1396_v62 }
  0x74   : > { %1079 = verf.f32 %v414_v52  ;;  %v485_v52 = vsub.f32 %v474_v63, %v1399_v0 }
  0x75   : > { %v1062_v33 = vpop.eup %1061  ;;  %1081 = verf.f32 %v415_v56  ;;  %v610_v56 = vrot.slane %v599_v41, %v1415_v5 }
  0x76   : > { %v1064_v32 = vpop.eup %1063  ;;  %v281_v59 = vadd.f32 1.0, %v1062_v33  ;;  %1083 = verf.f32 %v416_v57  ;;  %v614_v33 = vrot.slane %v599_v41, %v1422_v8 }
  0x77   : > { %v1066_v40 = vpop.eup %1065  ;;  %v282_v55 = vadd.f32 1.0, %v1064_v32  ;;  %1085 = verf.f32 %v483_v44  ;;  %v1553_v32 = vsub.f32 %v544_v39, %v1399_v0  ;;  %v618_v44 = vrot.slane %v599_v41, %v1425_v9 }
  0x78   : > { %v1068_v58 = vpop.eup %1067  ;;  %v283_v47 = vadd.f32 1.0, %v1066_v40  ;;  %v285_v63 = vmul.f32 0.5, %v281_v59  ;;  %1087 = verf.f32 %v484_v50  ;;  %v1558_v40 = vsub.f32 %v548_v53, %v1405_v2 }
  0x79   : > { %v1070_v57 = vpop.eup %1069  ;;  %v284_v37 = vadd.f32 1.0, %v1068_v58  ;;  %v286_v35 = vmul.f32 0.5, %v282_v55  ;;  %v1562_v59 = vsub.f32 %v606_v51, %v1394_v60  ;;  %v1565_v38 = vsub.f32 %v610_v56, %v1396_v62 }
  0x7a   : > { %v1072_v42 = vpop.eup %1071  ;;  %v287_v34 = vmul.f32 0.5, %v283_v47  ;;  %v351_v58 = vadd.f32 1.0, %v1070_v57  ;;  %1089 = verf.f32 %v485_v52  ;;  %v1568_v55 = vsub.f32 %v614_v33, %v1399_v0 }
  0x7b   : > { %v1074_v48 = vpop.eup %1073  ;;  %v288_v31 = vmul.f32 0.5, %v284_v37  ;;  %v352_v30 = vadd.f32 1.0, %v1072_v42  ;;  %v310_v41 = vmul.f32 %v293_v19, %v285_v63  ;;  %1091 = verf.f32 %v486_v54 }
  0x7c   : > { %v1076_v39 = vpop.eup %1075  ;;  %v353_v47 = vadd.f32 1.0, %v1074_v48  ;;  %v676_v51 = vrot.slane %v1555_v36, %v1412_v4  ;;  %v311_v37 = vmul.f32 %v297_v20, %v286_v35  ;;  %v626_v52 = vsub.f32 %v618_v44, %v1405_v2 }
  0x7d   : > { %v1078_v50 = vpop.eup %1077  ;;  %v354_v56 = vadd.f32 1.0, %v1076_v39  ;;  %v680_v33 = vrot.slane %v1555_v36, %v1415_v5  ;;  %v312_v19 = vmul.f32 %v301_v21, %v287_v34  ;;  %v355_v54 = vmul.f32 0.5, %v351_v58 }
  0x7e   : > { %v1080_v53 = vpop.eup %1079  ;;  %v421_v63 = vadd.f32 1.0, %v1078_v50  ;;  %1093 = verf.f32 %v553_v46  ;;  %v313_v48 = vmul.f32 %v305_v22, %v288_v31  ;;  %v356_v20 = vmul.f32 0.5, %v352_v30 }
  0x7f   : > { %v1082_v57 = vpop.eup %1081  ;;  %v422_v35 = vadd.f32 1.0, %v1080_v53  ;;  %v314_v44 = vadd.f32 %v310_v41, %v1417_v6  ;;  %v357_v29 = vmul.f32 0.5, %v353_v47  ;;  %v688_v21 = vrot.slane %v1555_v36, %v1425_v9 }
  0x80   : > { %v1084_v42 = vpop.eup %1083  ;;  %v423_v39 = vadd.f32 1.0, %v1082_v57  ;;  %v315_v46 = vadd.f32 %v311_v37, %v1427_v10  ;;  %v358_v58 = vmul.f32 0.5, %v354_v56  ;;  %v693_v3 = vsub.f32 %v676_v51, %v1394_v60 }
  0x81   : > { %v1086_v34 = vpop.eup %1085  ;;  %v424_v50 = vadd.f32 1.0, %v1084_v42  ;;  %v316_v22 = vadd.f32 %v312_v19, %v1429_v12  ;;  %v380_v6 = vmul.f32 %v363_v23, %v355_v54  ;;  %v425_v30 = vmul.f32 0.5, %v421_v63  ;;  %v739_v19 = vld [vmem:[#allocation2 + $0x7] ss:$8 sm:$0xf] }
  0x82   : > { %v694_v31 = vsub.f32 %v680_v33, %v1396_v62  ;;  %v1088_v41 = vpop.eup %1087  ;;  %v317_v47 = vadd.f32 %v313_v48, %v1431_v13  ;;  %v381_v10 = vmul.f32 %v367_v24, %v356_v20  ;;  %v426_v36 = vmul.f32 0.5, %v422_v35 }
  0x83   : > { %v427_v53 = vmul.f32 0.5, %v423_v39  ;;  %v382_v12 = vmul.f32 %v371_v25, %v357_v29  ;;  %v384_v51 = vadd.f32 %v380_v6, %v314_v44  ;;  %v491_v37 = vadd.f32 1.0, %v1086_v34 }
  0x84   : > { %v695_v23 = vsub.f32 %v684_v28, %v1399_v0  ;;  %v1090_v56 = vpop.eup %1089  ;;  %v383_v33 = vmul.f32 %v375_v26, %v358_v58  ;;  %v385_v13 = vadd.f32 %v381_v10, %v315_v46  ;;  %v428_v57 = vmul.f32 0.5, %v424_v50 }
  0x85   : > { %1095 = verf.f32 %v1550_v45  ;;  %v1092_v24 = vpop.eup %1091  ;;  %v386_v54 = vadd.f32 %v382_v12, %v316_v22  ;;  %v1766_v63 = vrot.slane %v1433_v14, %v1412_v4  ;;  %v492_v29 = vadd.f32 1.0, %v1088_v41 }
  0x86   : > { %1097 = verf.f32 %v1553_v32  ;;  %v387_v28 = vadd.f32 %v383_v33, %v317_v47  ;;  %v1767_v42 = vrot.slane %v1433_v14, %v1415_v5  ;;  %v1768_v26 = vrot.slane %v1433_v14, %v1422_v8 }
  0x87   : > { %v450_v25 = vmul.f32 %v1766_v63, %v425_v30  ;;  %1099 = verf.f32 %v1558_v40  ;;  %v493_v35 = vadd.f32 1.0, %v1090_v56  ;;  %v495_v39 = vmul.f32 0.5, %v491_v37 }
  0x88   : > { %v451_v7 = vmul.f32 %v1767_v42, %v426_v36  ;;  %v452_v48 = vmul.f32 %v1768_v26, %v427_v53  ;;  %v1094_v45 = vpop.eup %1093  ;;  %1101 = verf.f32 %v1562_v59  ;;  %v1769_v32 = vrot.slane %v1433_v14, %v1425_v9 }
  0x89   : > { %v454_v20 = vadd.f32 %v450_v25, %v384_v51  ;;  %v494_v34 = vadd.f32 1.0, %v1092_v24  ;;  %1103 = verf.f32 %v1565_v38  ;;  %v746_v46 = vrot.slane %v739_v19, %v1412_v4 }
  0x8a   : > { %v453_v44 = vmul.f32 %v1769_v32, %v428_v57  ;;  %v496_v58 = vmul.f32 0.5, %v492_v29  ;;  %1105 = verf.f32 %v1568_v55  ;;  %v750_v40 = vrot.slane %v739_v19, %v1415_v5 }
  0x8b   : > { %v754_v50 = vrot.slane %v739_v19, %v1422_v8  ;;  %v561_v22 = vadd.f32 1.0, %v1094_v45  ;;  %1107 = verf.f32 %v626_v52  ;;  %v696_v59 = vsub.f32 %v688_v21, %v1405_v2 }
  0x8c   : > { %v758_v6 = vrot.slane %v739_v19, %v1425_v9  ;;  %v455_v14 = vadd.f32 %v451_v7, %v385_v13  ;;  %v497_v30 = vmul.f32 0.5, %v493_v35  ;;  %1109 = verf.f32 %v693_v3 }
  0x8d   : > { %v763_v38 = vsub.f32 %v746_v46, %v1394_v60  ;;  %v456_v41 = vadd.f32 %v452_v48, %v386_v54  ;;  %v498_v47 = vmul.f32 0.5, %v494_v34  ;;  %1111 = verf.f32 %v694_v31 }
  0x8e   : > { %v764_v55 = vsub.f32 %v750_v40, %v1396_v62  ;;  %v457_v10 = vadd.f32 %v453_v44, %v387_v28  ;;  %v1770_v36 = vrot.slane %v1435_v18, %v1412_v4  ;;  %1113 = verf.f32 %v695_v23 }
  0x8f   : > { %v765_v52 = vsub.f32 %v754_v50, %v1399_v0  ;;  %v1096_v21 = vpop.eup %1095  ;;  %v1771_v12 = vrot.slane %v1435_v18, %v1415_v5  ;;  %v565_v51 = vmul.f32 0.5, %v561_v22  ;;  %1115 = verf.f32 %v696_v59 }
  0x90   : > { %v520_v53 = vmul.f32 %v1770_v36, %v495_v39  ;;  %v766_v60 = vsub.f32 %v758_v6, %v1405_v2  ;;  %v1098_v31 = vpop.eup %1097  ;;  %v1772_v62 = vrot.slane %v1435_v18, %v1422_v8  ;;  %v562_v33 = vadd.f32 1.0, %v1096_v21 }
  0x91   : > { %v521_v3 = vmul.f32 %v1771_v12, %v496_v58  ;;  %1117 = verf.f32 %v763_v38  ;;  %v1100_v23 = vpop.eup %1099  ;;  %v1773_v0 = vrot.slane %v1435_v18, %v1425_v9  ;;  %v563_v24 = vadd.f32 1.0, %v1098_v31 }
  0x92   : > { %v522_v37 = vmul.f32 %v1772_v62, %v497_v30  ;;  %v524_v56 = vadd.f32 %v520_v53, %v454_v20  ;;  %1119 = verf.f32 %v764_v55  ;;  %v1102_v19 = vpop.eup %1101  ;;  %v564_v63 = vadd.f32 1.0, %v1100_v23 }
  0x93   : > { %v523_v13 = vmul.f32 %v1773_v0, %v498_v47  ;;  %v525_v57 = vadd.f32 %v521_v3, %v455_v14  ;;  %v566_v2 = vmul.f32 0.5, %v562_v33  ;;  %1121 = verf.f32 %v765_v52  ;;  %v1104_v25 = vpop.eup %1103 }
  0x94   : > { %v526_v54 = vadd.f32 %v522_v37, %v456_v41  ;;  %v567_v29 = vmul.f32 0.5, %v563_v24  ;;  %v1774_v28 = vrot.slane %v1453_v27, %v1412_v4  ;;  %v631_v7 = vadd.f32 1.0, %v1102_v19  ;;  %v1106_v26 = vpop.eup %1105 }
  0x95   : > { %1123 = verf.f32 %v766_v60  ;;  %v527_v48 = vadd.f32 %v523_v13, %v457_v10  ;;  %v568_v18 = vmul.f32 0.5, %v564_v63  ;;  %v1775_v45 = vrot.slane %v1453_v27, %v1415_v5  ;;  %v1108_v39 = vpop.eup %1107 }
  0x96   : > { %v590_v42 = vmul.f32 %v1774_v28, %v565_v51  ;;  %v632_v35 = vadd.f32 1.0, %v1104_v25  ;;  %v1776_v32 = vrot.slane %v1453_v27, %v1422_v8  ;;  %v633_v46 = vadd.f32 1.0, %v1106_v26  ;;  %v1110_v40 = vpop.eup %1109 }
  0x97   : > { %v591_v20 = vmul.f32 %v1775_v45, %v566_v2  ;;  %v635_v58 = vmul.f32 0.5, %v631_v7  ;;  %v1777_v50 = vrot.slane %v1453_v27, %v1425_v9  ;;  %v634_v6 = vadd.f32 1.0, %v1108_v39  ;;  %v1112_v30 = vpop.eup %1111 }
  0x98   : > { %v592_v44 = vmul.f32 %v1776_v32, %v567_v29  ;;  %v594_v34 = vadd.f32 %v590_v42, %v524_v56  ;;  %v636_v14 = vmul.f32 0.5, %v632_v35  ;;  %v637_v41 = vmul.f32 0.5, %v633_v46  ;;  %v1114_v36 = vpop.eup %1113 }
  0x99   : > { %v593_v22 = vmul.f32 %v1777_v50, %v568_v18  ;;  %v595_v59 = vadd.f32 %v591_v20, %v525_v57  ;;  %v1778_v47 = vrot.slane %v1475_v43, %v1412_v4  ;;  %v701_v10 = vadd.f32 1.0, %v1110_v40  ;;  %v1116_v3 = vpop.eup %1115 }
  0x9a   : > { %v596_v38 = vadd.f32 %v592_v44, %v526_v54  ;;  %v638_v52 = vmul.f32 0.5, %v634_v6  ;;  %v1779_v21 = vrot.slane %v1475_v43, %v1415_v5  ;;  %v702_v27 = vadd.f32 1.0, %v1112_v30 }
  0x9b   : > { %v660_v55 = vmul.f32 %v1778_v47, %v635_v58  ;;  %v597_v53 = vadd.f32 %v593_v22, %v527_v48  ;;  %v1780_v51 = vrot.slane %v1475_v43, %v1422_v8  ;;  %v703_v62 = vadd.f32 1.0, %v1114_v36  ;;  %v1118_v56 = vpop.eup %1117 }
  0x9c   : > { %v661_v12 = vmul.f32 %v1779_v21, %v636_v14  ;;  %v705_v37 = vmul.f32 0.5, %v701_v10  ;;  %v1781_v33 = vrot.slane %v1475_v43, %v1425_v9  ;;  %v704_v13 = vadd.f32 1.0, %v1116_v3  ;;  %v1120_v24 = vpop.eup %1119 }
  0x9d   : > { %v662_v60 = vmul.f32 %v1780_v51, %v637_v41  ;;  %v664_v31 = vadd.f32 %v660_v55, %v594_v34  ;;  %v706_v57 = vmul.f32 0.5, %v702_v27  ;;  %v707_v54 = vmul.f32 0.5, %v703_v62  ;;  %v1122_v29 = vpop.eup %1121  ;;  %v985_v51 = vld [vmem:[%s1364_s7 + $0x68] sm:$0xff] }
  0x9e   : > { %v663_v23 = vmul.f32 %v1781_v33, %v638_v52  ;;  %v665_v0 = vadd.f32 %v661_v12, %v595_v59  ;;  %v1782_v63 = vrot.slane %v1497_v61, %v1412_v4  ;;  %v771_v25 = vadd.f32 1.0, %v1118_v56  ;;  %v984_v12 = vld [vmem:[%s1364_s7 + $0x60] sm:$0xff] }
  0x9f   : > { %v666_v19 = vadd.f32 %v662_v60, %v596_v38  ;;  %v708_v42 = vmul.f32 0.5, %v704_v13  ;;  %v1783_v7 = vrot.slane %v1497_v61, %v1415_v5  ;;  %v772_v43 = vadd.f32 1.0, %v1120_v24  ;;  %v1124_v48 = vpop.eup %1123  ;;  %v986_v60 = vld [vmem:[%s1364_s7 + $0x70] sm:$0xff] }
  0xa0   : > { %v730_v2 = vmul.f32 %v1782_v63, %v705_v37  ;;  %v667_v28 = vadd.f32 %v663_v23, %v597_v53  ;;  %v1784_v18 = vrot.slane %v1497_v61, %v1422_v8  ;;  %v773_v35 = vadd.f32 1.0, %v1122_v29  ;;  %v987_v37 = vld [vmem:[%s1364_s7 + $0x78] sm:$0xff] }
  0xa1   : > { %v731_v26 = vmul.f32 %v1783_v7, %v706_v57  ;;  %v775_v39 = vmul.f32 0.5, %v771_v25  ;;  %v1785_v32 = vrot.slane %v1497_v61, %v1425_v9  ;;  %v774_v46 = vadd.f32 1.0, %v1124_v48 }
  0xa2   : > { %v732_v45 = vmul.f32 %v1784_v18, %v707_v54  ;;  %v734_v20 = vadd.f32 %v730_v2, %v664_v31  ;;  %v776_v58 = vmul.f32 0.5, %v772_v43  ;;  %v777_v50 = vmul.f32 0.5, %v773_v35 }
  0xa3   : > { %v733_v44 = vmul.f32 %v1785_v32, %v708_v42  ;;  %v735_v34 = vadd.f32 %v731_v26, %v665_v0  ;;  %v1786_v22 = vrot.slane %v1511_v49, %v1412_v4  ;;  %v778_v14 = vmul.f32 0.5, %v774_v46 }
  0xa4   : > { %v736_v40 = vadd.f32 %v732_v45, %v666_v19  ;;  %v1787_v30 = vrot.slane %v1511_v49, %v1415_v5  ;;  %v1788_v61 = vrot.slane %v1511_v49, %v1422_v8  ;;  %v1789_v55 = vrot.slane %v1511_v49, %v1425_v9 }
  0xa5   : > { %v800_v59 = vmul.f32 %v1786_v22, %v775_v39  ;;  %v737_v6 = vadd.f32 %v733_v44, %v667_v28 }
  0xa6   : > { %v801_v38 = vmul.f32 %v1787_v30, %v776_v58  ;;  %v802_v41 = vmul.f32 %v1788_v61, %v777_v50  ;;  %v803_v10 = vmul.f32 %v1789_v55, %v778_v14  ;;  %v1790_v30 = vlaneseq }
  0xa7   : > { %v804_v47 = vadd.f32 %v800_v59, %v734_v20 }
  0xa8   : > { %v805_v36 = vadd.f32 %v801_v38, %v735_v34  ;;  %v806_v4 = vadd.f32 %v802_v41, %v736_v40  ;;  %v807_v53 = vadd.f32 %v803_v10, %v737_v6  ;;  %vm879_vm0 = vcmp.lt.s32.totalorder %v1790_v30, 512 }
  0xa9   : > { %1125 = vlog2.f32 %v804_v47 }
  0xaa   : > { %1127 = vlog2.f32 %v805_v36 }
  0xab   : > { %1129 = vlog2.f32 %v806_v4 }
  0xac   : > { %1131 = vlog2.f32 %v807_v53 }
  0xb3   : > { %v1126_v5 = vpop.eup %1125 }
  0xb4   : > { %v1128_v52 = vpop.eup %1127  ;;  %v809_v21 = vmul.f32 0.6931472, %v1126_v5 }
  0xb5   : > { %v1130_v8 = vpop.eup %1129  ;;  %v811_v27 = vmul.f32 0.6931472, %v1128_v52 }
  0xb6   : > { %v1132_v3 = vpop.eup %1131  ;;  %v813_v9 = vmul.f32 0.6931472, %v1130_v8  ;;  %v816_v49 = vsub.f32 %v1379_v11, %v809_v21  ;;  %v1235_v11 = vmov 1966171168  }
  0xb7   : > { %v815_v31 = vmul.f32 0.6931472, %v1132_v3  ;;  %v817_v62 = vsub.f32 %v1383_v15, %v811_v27  ;;  %v855_v29 = vunpack.c.l.s4 %v1235_v11 }
  0xb8   : > { %v818_v56 = vsub.f32 %v1386_v16, %v813_v9  ;;  %v820_v33 = vmul.f32 %v984_v12, %v816_v49 }
  0xb9   : > { %v819_v23 = vsub.f32 %v1389_v17, %v815_v31  ;;  %v821_v0 = vmul.f32 %v985_v51, %v817_v62  ;;  %v856_v48 = vunpack.c.0.s8 %v855_v29 }
  0xba   : > { %v822_v13 = vmul.f32 %v986_v60, %v818_v56  ;;  %v824_v57 = vrot.slane %v820_v33, 4 }
  0xbb   : > { %v823_v24 = vmul.f32 %v987_v37, %v819_v23  ;;  %v830_v19 = vrot.slane %v821_v0, 4  ;;  %v859_v46 = vsub.s32 %v856_v48, %v1402_v1 }
  0xbc   : > { %v825_v54 = vadd.f32 %v824_v57, %v820_v33  ;;  %v836_v63 = vrot.slane %v822_v13, 4 }
  0xbd   : > { %v831_v2 = vadd.f32 %v830_v19, %v821_v0  ;;  %v842_v25 = vrot.slane %v823_v24, 4 }
  0xbe   : > { %v826_v28 = vrot.slane %v825_v54, 2  ;;  %v837_v42 = vadd.f32 %v836_v63, %v822_v13 }
  0xbf   : > { %v832_v15 = vrot.slane %v831_v2, 2  ;;  %v843_v7 = vadd.f32 %v842_v25, %v823_v24 }
  0xc0   : > { %v827_v16 = vadd.f32 %v826_v28, %v825_v54  ;;  %v838_v26 = vrot.slane %v837_v42, 2 }
  0xc1   : > { %v833_v43 = vadd.f32 %v832_v15, %v831_v2  ;;  %v844_v17 = vrot.slane %v843_v7, 2 }
  0xc2   : > { %v828_v18 = vrot.slane %v827_v16, 1  ;;  %v839_v45 = vadd.f32 %v838_v26, %v837_v42 }
  0xc3   : > { %v834_v20 = vrot.slane %v833_v43, 1  ;;  %v845_v35 = vadd.f32 %v844_v17, %v843_v7 }
  0xc4   : > { %v829_v39 = vadd.f32 %v828_v18, %v827_v16  ;;  %v840_v32 = vrot.slane %v839_v45, 1 }
  0xc5   : > { %v835_v44 = vadd.f32 %v834_v20, %v833_v43  ;;  %v846_v34 = vrot.slane %v845_v35, 1 }
  0xc6   : > { %v841_v58 = vadd.f32 %v840_v32, %v839_v45 }
  0xc7   : > { %v847_v40 = vadd.f32 %v846_v34, %v845_v35  ;;  %v852_v50 = vcombine.low %v829_v39, %v835_v44 }
  0xc9   : > { %v853_v22 = vcombine.low %v841_v58, %v847_v40  ;;  %v860_v59 = vrot.slane %v852_v50, %v859_v46 }
  0xcb   : > { %v867_v6 = vrot.slane %v853_v22, %v859_v46 }
  0xcd   : > { %v868_v14 = vcombine.low %v860_v59, %v867_v6 }
  0xcf   : > { %v875_v38 = vrot.slane %v868_v14, %v859_v46 }
  0xd1   : > { %881 = vst.msk [vmem:[%s162_s3] sm:$0xf] %vm879_vm0, %v875_v38 }
  0xd2   : > { %1176 = shalt.err (!%p1173_p2)
}
  0xd3   : > { %s1177_s24 = scalar_lea.hbm %s1714_s10, 64  ;;  %s1181_s27 = scalar_lea.hbm %s1757_s2, 256 }
  0xd4   : > { %p1178_p4 = scmp.ne.s32.totalorder %s1714_s10, %s1177_s24  ;;  %p1182_p13 = scmp.lt.u32.totalorder %s1714_s10, %s1757_s2 }
  0xd5   : > { %p1183_p1 = scmp.lt.u32.totalorder %s1181_s27, %s1177_s24  ;;  %p1185_p6 = scmp.lt.u32.totalorder %s1177_s24, %s1714_s10 }
  0xd6   : > { %p1179_p5 = pnand %p1178_p4, %p1791_p10 }
  0xd7   : > { %p1184_p3 = por %p1183_p1, %p1182_p13 }
  0xd8   : > { %p1180_p7 = pneg %p1179_p5 }
  0xd9   : > { %p1186_p11 = por %p1185_p6, %p1184_p3 }
  0xdb   : > { %p1187_p12 = pnand %p1186_p11, %p1180_p7 }
  0xdd   : > { %1190 = shalt.err (!%p1187_p12)
}
  0xde   : > { %997 = dma.vmem_to_hbm [thread:$0]  (%p1791_p10), %s1709_s4, 64, %s1714_s10, %s883_s15  }
  0xdf PF: > { %p1008_p8 = scmp.ge.s32.totalorder %s1229_s14, 2  ;;  %s909_s6 = sand.u32 1, %s1217_s11  }
  0xe0   : > { %p1792_p9 = scmp.ne.s32.totalorder %s1763_s23, 0  ;;  %s910_s7 = scalar_lea.sflag [#allocation7], %s909_s6 }
  0xe2   : > { %p1004_p0 = pnand %p1008_p8, %p1792_p9 }
  0xe4   : > { %1212 = dma.done.wait (!%p1004_p0), %s910_s7, 64  }
  0xe5   : > { %1214 = vsyncadd (!%p1004_p0), %s910_s7, 4294967232  ;;  %p16_p2 = scmp.ge.s32.totalorder %s1280_s16, 6   ;;  %s1793_s11 = smov %s1221_s12 }
  0xe6   : > { %s1794_s12 = smov %s1225_s13  ;;  %s1795_s13 = smov %s1292_s19 }
  0xe7   : > { %s1796_s14 = smov %s1280_s16  ;;  %18 = sbr.rel (!%p16_p2) target bundleno = 7 (0x7), region = 90 }
  0xee   :  { %915 = vsyncpa [#allocation6], 1 }
  0xef   :  { %917 = vsyncpa [#allocation6 + $0x1], 1 }
  0xf0   :  { %918 = vsyncpa [#allocation7], 1 }
  0xf1   :  { %920 = vsyncpa [#allocation7 + $0x1], 1 }

</bundles_post_ra>
